<compile_context>
chip_gen: v7x
topology: tpu7x:2x2x1
jax: 0.10.0
libtpu: 0.0.40
codegen_flags: <defaults>
</compile_context>

<pallas_src>
import jax
import jax.numpy as jnp
from jax.experimental import pallas as pl
from jax.experimental.pallas import tpu as pltpu

_LANE = 128          # vreg lane width
_SUBLANE = 8         # vreg sublane count (f32)
_PAD_LOGIT = -1e4    # pad logit -> sigmoid == 0 exactly -> contributes nothing
_BCE_CLAMP = 100.0   # matches PyTorch nn.BCELoss log clamp at -100


def _cdiv(a, b):
    return (a + b - 1) // b


def _make_kernel(tile_r, needs_mask, valid_rows_last):
    def kernel(x_ref, t_ref, o_ref, bce_acc, inter_acc, psum_acc, tsum_acc):
        c = pl.program_id(1)
        r = pl.program_id(2)
        nc = pl.num_programs(1)
        nr = pl.num_programs(2)

        @pl.when(r == 0)
        def _init():
            bce_acc[...] = jnp.zeros_like(bce_acc)
            inter_acc[...] = jnp.zeros_like(inter_acc)
            psum_acc[...] = jnp.zeros_like(psum_acc)
            tsum_acc[...] = jnp.zeros_like(tsum_acc)

        def accumulate(valid_rows):
            x = x_ref[0].astype(jnp.float32)    # (tile_r, 128) logits
            t = t_ref[0].astype(jnp.float32)    # (tile_r, 128) targets in [0, 1]
            if valid_rows is not None:
                row = jax.lax.broadcasted_iota(jnp.int32, (tile_r, _LANE), 0)
                keep = row < valid_rows
                x = jnp.where(keep, x, _PAD_LOGIT)   # sigmoid(pad)=0, bce(pad)=0
                t = jnp.where(keep, t, 0.0)

            # Stable BCE-with-logits with 2 EUP transcendentals (exp, log):
            #   softplus(x)  = max(x,0) + log(1+exp(-|x|)) = -log(1 - sigmoid(x))
            #   softplus(-x) = softplus(x) - x             = -log(sigmoid(x))
            # Each term is clamped at 100 (nn.BCELoss clamps log at -100).
            e = jnp.exp(-jnp.abs(x))
            a = 1.0 + e
            lg = jnp.log(a)                       # reused for sigmoid below
            sp_pos = jnp.maximum(x, 0.0) + lg
            sp_neg = sp_pos - x
            m_pos = jnp.minimum(sp_pos, _BCE_CLAMP)
            m_neg = jnp.minimum(sp_neg, _BCE_CLAMP)
            bce_el = m_pos + t * (m_neg - m_pos)

            # sigmoid(x) from the same exp(-|x|): approx EUP reciprocal + one
            # Newton step (pure VPU) keeps the EUP slot light, error ~1e-7.
            inv = pl.reciprocal(a, approx=True)
            inv = inv * (2.0 - a * inv)
            p = jnp.where(x >= 0.0, inv, e * inv)

            # Pure-VPU accumulation: reduce only the leading vreg-group axis,
            # keep full (8,128) partials resident in VMEM.
            def acc(ref, v):
                ref[...] += jnp.sum(v.reshape(-1, _SUBLANE, _LANE), axis=0)

            acc(bce_acc, bce_el)
            acc(inter_acc, p * t)
            acc(psum_acc, p)
            acc(tsum_acc, t)

        if needs_mask:
            is_last = (c == nc - 1) & (r == nr - 1)

            @pl.when(jnp.logical_not(is_last))
            def _full():
                accumulate(None)

            @pl.when(is_last)
            def _ragged():
                accumulate(valid_rows_last)
        else:
            accumulate(None)

        # Finalize once per (sample, chunk): one cross-lane/sublane reduce per
        # accumulator, packed into a lane-dense (8,128) output block
        # (row 0 = bce sum, 1 = intersection, 2 = sum(p), 3 = sum(t)).
        @pl.when(r == nr - 1)
        def _finalize():
            bce_s = jnp.sum(bce_acc[...])
            inter_s = jnp.sum(inter_acc[...])
            psum_s = jnp.sum(psum_acc[...])
            tsum_s = jnp.sum(tsum_acc[...])
            row = jax.lax.broadcasted_iota(jnp.int32, (_SUBLANE, _LANE), 0)
            o_ref[0, 0] = (jnp.where(row == 0, bce_s, 0.0)
                           + jnp.where(row == 1, inter_s, 0.0)
                           + jnp.where(row == 2, psum_s, 0.0)
                           + jnp.where(row == 3, tsum_s, 0.0))

    return kernel


def bce_dice_loss(logits, target, *, max_tile_rows=4096):
    """BCEDiceLoss_newversion forward. logits/target: (N, ...). Returns f32 scalar."""
    n = logits.shape[0]
    d = 1
    for dim in logits.shape[1:]:
        d *= dim

    x = logits.reshape(n, d)
    t = target.reshape(n, d)

    # Dtype-aware sublane granularity (packed rows per vreg): 8/16/32 for 4/2/1-byte.
    sub_of = {4: 8, 2: 16, 1: 32}
    sub = max(sub_of.get(x.dtype.itemsize, _SUBLANE),
              sub_of.get(t.dtype.itemsize, _SUBLANE))

    # Rows of 128 lanes per sample.  Pad (an actual copy) only when d is not
    # lane-aligned or a sample is smaller than one sublane slab; raggedness of
    # the row count vs. tile_r is masked inside the kernel instead.
    rows = max(_cdiv(d, _LANE), sub)
    d_lane = rows * _LANE
    if d_lane != d:
        x = jnp.pad(x, ((0, 0), (0, d_lane - d)), constant_values=_PAD_LOGIT)
        t = jnp.pad(t, ((0, 0), (0, d_lane - d)), constant_values=0)
    x = x.reshape(n, rows, _LANE)
    t = t.reshape(n, rows, _LANE)

    tile_cap = max(sub, (max_tile_rows // sub) * sub)
    tile_r = min(tile_cap, (rows // sub) * sub)        # multiple of sub, <= rows
    num_r_tiles = _cdiv(rows, tile_r)

    # Optional chunk axis so a single-sample call can use both v7x TensorCores.
    if n == 1 and num_r_tiles >= 2 and num_r_tiles % 2 == 0:
        n_chunks = 2
    else:
        n_chunks = 1
    tiles_per_chunk = num_r_tiles // n_chunks

    needs_mask = (rows % tile_r) != 0
    valid_rows_last = rows - (num_r_tiles - 1) * tile_r

    kernel = _make_kernel(tile_r, needs_mask, valid_rows_last)

    parts = pl.pallas_call(
        kernel,
        out_shape=jax.ShapeDtypeStruct((n, n_chunks, _SUBLANE, _LANE), jnp.float32),
        grid=(n, n_chunks, tiles_per_chunk),
        in_specs=[
            pl.BlockSpec((1, tile_r, _LANE),
                         lambda s, c, r: (s, c * tiles_per_chunk + r, 0)),
            pl.BlockSpec((1, tile_r, _LANE),
                         lambda s, c, r: (s, c * tiles_per_chunk + r, 0)),
        ],
        out_specs=pl.BlockSpec((1, 1, _SUBLANE, _LANE),
                               lambda s, c, r: (s, c, 0, 0)),
        scratch_shapes=[
            pltpu.VMEM((_SUBLANE, _LANE), jnp.float32),  # bce partial
            pltpu.VMEM((_SUBLANE, _LANE), jnp.float32),  # intersection partial
            pltpu.VMEM((_SUBLANE, _LANE), jnp.float32),  # sum(p) partial
            pltpu.VMEM((_SUBLANE, _LANE), jnp.float32),  # sum(t) partial
        ],
        compiler_params=pltpu.CompilerParams(
            dimension_semantics=("parallel", "parallel", "arbitrary"),
            vmem_limit_bytes=32 * 1024 * 1024,
        ),
    )(x, t)

    # O(N * n_chunks) final combine (dice + means) in plain JAX.
    bce_sum = jnp.sum(parts[:, :, 0, 0], axis=1)
    inter = jnp.sum(parts[:, :, 1, 0], axis=1)
    psum = jnp.sum(parts[:, :, 2, 0], axis=1)
    tsum = jnp.sum(parts[:, :, 3, 0], axis=1)

    bce = jnp.sum(bce_sum) / jnp.float32(n * d)
    smooth = jnp.float32(1e-05)
    dice = (2.0 * inter * inter + smooth) / (psum * psum + tsum * tsum + smooth)
    dice_loss = 1.0 - jnp.sum(dice) / jnp.float32(n)
    return bce + dice_loss


def _reference(logits, target):
    # Pure-JAX reference mirroring the PyTorch module (sigmoid + clamped BCE + dice).
    n = logits.shape[0]
    p = jax.nn.sigmoid(logits.reshape(n, -1).astype(jnp.float32))
    t = target.reshape(n, -1).astype(jnp.float32)
    bce = jnp.mean(-(t * jnp.maximum(jnp.log(p), -100.0)
                     + (1.0 - t) * jnp.maximum(jnp.log(1.0 - p), -100.0)))
    smooth = 1e-05
    inter = jnp.sum(p * t, axis=1)
    dice = (2.0 * inter ** 2 + smooth) / (jnp.sum(p, axis=1) ** 2
                                          + jnp.sum(t, axis=1) ** 2 + smooth)
    return bce + (1.0 - jnp.sum(dice) / n)


if __name__ == "__main__":
    key = jax.random.PRNGKey(0)
    k1, k2, k3, k4, k5, k6 = jax.random.split(key, 6)

    # Primary shape (N, C, H, W) = (2, 4, 16, 16): d = 1024, lane-aligned (no pad/mask).
    x = jax.random.normal(k1, (2, 4, 16, 16), dtype=jnp.float32)
    tgt = (jax.random.uniform(k2, (2, 4, 16, 16)) > 0.5).astype(jnp.float32)
    loss = bce_dice_loss(x, tgt)
    jax.block_until_ready(loss)
    ref = _reference(x, tgt)
    assert jnp.allclose(loss, ref, rtol=1e-4, atol=1e-4), (loss, ref)

    # Ragged shape (d = 1200): exercises lane padding + masked last row tile.
    x2 = jax.random.normal(k3, (2, 3, 20, 20), dtype=jnp.float32)
    t2 = (jax.random.uniform(k4, (2, 3, 20, 20)) > 0.5).astype(jnp.float32)
    loss2 = bce_dice_loss(x2, t2)
    ref2 = _reference(x2, t2)
    assert jnp.allclose(loss2, ref2, rtol=1e-4, atol=1e-4), (loss2, ref2)

    # Single-sample shape with small tiles: exercises the chunked (2-TC) path.
    x3 = jax.random.normal(k5, (1, 4, 32, 32), dtype=jnp.float32)
    t3 = (jax.random.uniform(k6, (1, 4, 32, 32)) > 0.5).astype(jnp.float32)
    loss3 = bce_dice_loss(x3, t3, max_tile_rows=8)
    ref3 = _reference(x3, t3)
    assert jnp.allclose(loss3, ref3, rtol=1e-4, atol=1e-4), (loss3, ref3)

    jax.block_until_ready((loss, loss2, loss3))
    print("KERNEL_OK")
</pallas_src>

<mosaic_0001>
module attributes {stable_mosaic.version = 11 : i64} {
  func.func @kernel(%arg0: i32, %arg1: i32, %arg2: i32, %arg3: memref<1x8x128xf32, #tpu.memory_space<vmem>>, %arg4: memref<1x8x128xf32, #tpu.memory_space<vmem>>, %arg5: memref<1x1x8x128xf32, #tpu.memory_space<vmem>>, %arg6: memref<8x128xf32, #tpu.memory_space<vmem>>, %arg7: memref<8x128xf32, #tpu.memory_space<vmem>>, %arg8: memref<8x128xf32, #tpu.memory_space<vmem>>, %arg9: memref<8x128xf32, #tpu.memory_space<vmem>>) attributes {dimension_semantics = [#tpu.dimension_semantics<parallel>, #tpu.dimension_semantics<parallel>, #tpu.dimension_semantics<arbitrary>], iteration_bounds = array<i64: 2, 1, 1>, scalar_prefetch = 0 : i64, scratch_operands = 4 : i64, tpu.core_type = #tpu.core_type<tc>, window_params = [{transform_indices = @transform_0, window_bounds = array<i64: 1, 8, 128>}, {transform_indices = @transform_1, window_bounds = array<i64: 1, 8, 128>}, {transform_indices = @transform_2, window_bounds = array<i64: 1, 1, 8, 128>}]} {
    %c0_i32 = arith.constant 0 : i32
    %0 = arith.cmpi eq, %arg2, %c0_i32 : i32
    %1 = arith.extui %0 : i1 to i32
    %c0_i32_0 = arith.constant 0 : i32
    %2 = arith.cmpi ne, %1, %c0_i32_0 : i32
    scf.if %2 {
      %cst_34 = arith.constant 0.000000e+00 : f32
      %58 = vector.broadcast %cst_34 : f32 to vector<8x128xf32>
      %c0_35 = arith.constant 0 : index
      %c0_36 = arith.constant 0 : index
      %59 = vector.load %arg6[%c0_35, %c0_36] : memref<8x128xf32, #tpu.memory_space<vmem>>, vector<8x128xf32>
      tpu.vector_store %arg6[%c0_35, %c0_36], %58 {strides = array<i32>} : memref<8x128xf32, #tpu.memory_space<vmem>>, vector<8x128xf32>,
      %cst_37 = arith.constant 0.000000e+00 : f32
      %60 = vector.broadcast %cst_37 : f32 to vector<8x128xf32>
      %c0_38 = arith.constant 0 : index
      %c0_39 = arith.constant 0 : index
      %61 = vector.load %arg7[%c0_38, %c0_39] : memref<8x128xf32, #tpu.memory_space<vmem>>, vector<8x128xf32>
      tpu.vector_store %arg7[%c0_38, %c0_39], %60 {strides = array<i32>} : memref<8x128xf32, #tpu.memory_space<vmem>>, vector<8x128xf32>,
      %cst_40 = arith.constant 0.000000e+00 : f32
      %62 = vector.broadcast %cst_40 : f32 to vector<8x128xf32>
      %c0_41 = arith.constant 0 : index
      %c0_42 = arith.constant 0 : index
      %63 = vector.load %arg8[%c0_41, %c0_42] : memref<8x128xf32, #tpu.memory_space<vmem>>, vector<8x128xf32>
      tpu.vector_store %arg8[%c0_41, %c0_42], %62 {strides = array<i32>} : memref<8x128xf32, #tpu.memory_space<vmem>>, vector<8x128xf32>,
      %cst_43 = arith.constant 0.000000e+00 : f32
      %64 = vector.broadcast %cst_43 : f32 to vector<8x128xf32>
      %c0_44 = arith.constant 0 : index
      %c0_45 = arith.constant 0 : index
      %65 = vector.load %arg9[%c0_44, %c0_45] : memref<8x128xf32, #tpu.memory_space<vmem>>, vector<8x128xf32>
      tpu.vector_store %arg9[%c0_44, %c0_45], %64 {strides = array<i32>} : memref<8x128xf32, #tpu.memory_space<vmem>>, vector<8x128xf32>,
    } else {
    }
    %c0 = arith.constant 0 : index
    %c0_1 = arith.constant 0 : index
    %c0_2 = arith.constant 0 : index
    %3 = vector.load %arg3[%c0, %c0_1, %c0_2] : memref<1x8x128xf32, #tpu.memory_space<vmem>>, vector<1x8x128xf32>
    %4 = vector.shape_cast %3 : vector<1x8x128xf32> to vector<8x128xf32>
    %c0_3 = arith.constant 0 : index
    %c0_4 = arith.constant 0 : index
    %c0_5 = arith.constant 0 : index
    %5 = vector.load %arg4[%c0_3, %c0_4, %c0_5] : memref<1x8x128xf32, #tpu.memory_space<vmem>>, vector<1x8x128xf32>
    %6 = vector.shape_cast %5 : vector<1x8x128xf32> to vector<8x128xf32>
    %7 = math.absf %4 : vector<8x128xf32>
    %cst = arith.constant 0.000000e+00 : f32
    %8 = vector.broadcast %cst : f32 to vector<8x128xf32>
    %9 = arith.subf %8, %7 : vector<8x128xf32>
    %10 = math.exp %9 : vector<8x128xf32>
    %cst_6 = arith.constant 1.000000e+00 : f32
    %11 = vector.broadcast %cst_6 : f32 to vector<8x128xf32>
    %12 = arith.addf %11, %10 : vector<8x128xf32>
    %13 = math.log %12 : vector<8x128xf32>
    %cst_7 = arith.constant 0.000000e+00 : f32
    %14 = vector.broadcast %cst_7 : f32 to vector<8x128xf32>
    %15 = arith.maximumf %4, %14 : vector<8x128xf32>
    %16 = arith.addf %15, %13 : vector<8x128xf32>
    %17 = arith.subf %16, %4 : vector<8x128xf32>
    %cst_8 = arith.constant 1.000000e+02 : f32
    %18 = vector.broadcast %cst_8 : f32 to vector<8x128xf32>
    %19 = arith.minimumf %16, %18 : vector<8x128xf32>
    %cst_9 = arith.constant 1.000000e+02 : f32
    %20 = vector.broadcast %cst_9 : f32 to vector<8x128xf32>
    %21 = arith.minimumf %17, %20 : vector<8x128xf32>
    %22 = arith.subf %21, %19 : vector<8x128xf32>
    %23 = arith.mulf %6, %22 : vector<8x128xf32>
    %24 = arith.addf %19, %23 : vector<8x128xf32>
    %25 = tpu.reciprocal %12 {approx = true} : vector<8x128xf32> -> vector<8x128xf32>
    %26 = arith.mulf %12, %25 : vector<8x128xf32>
    %cst_10 = arith.constant 2.000000e+00 : f32
    %27 = vector.broadcast %cst_10 : f32 to vector<8x128xf32>
    %28 = arith.subf %27, %26 : vector<8x128xf32>
    %29 = arith.mulf %25, %28 : vector<8x128xf32>
    %cst_11 = arith.constant 0.000000e+00 : f32
    %30 = vector.broadcast %cst_11 : f32 to vector<8x128xf32>
    %31 = arith.cmpf oge, %4, %30 : vector<8x128xf32>
    %32 = arith.mulf %10, %29 : vector<8x128xf32>
    %33 = arith.select %31, %29, %32 : vector<8x128xi1>, vector<8x128xf32>
    %c0_12 = arith.constant 0 : index
    %c0_13 = arith.constant 0 : index
    %34 = vector.load %arg6[%c0_12, %c0_13] : memref<8x128xf32, #tpu.memory_space<vmem>>, vector<8x128xf32>
    %35 = vector.shape_cast %24 : vector<8x128xf32> to vector<1x8x128xf32>
    %cst_14 = arith.constant dense<0.000000e+00> : vector<8x128xf32>
    %36 = vector.multi_reduction <add>, %35, %cst_14 [0] : vector<1x8x128xf32> to vector<8x128xf32>
    %37 = arith.addf %34, %36 : vector<8x128xf32>
    %c0_15 = arith.constant 0 : index
    %c0_16 = arith.constant 0 : index
    %38 = vector.load %arg6[%c0_15, %c0_16] : memref<8x128xf32, #tpu.memory_space<vmem>>, vector<8x128xf32>
    tpu.vector_store %arg6[%c0_15, %c0_16], %37 {strides = array<i32>} : memref<8x128xf32, #tpu.memory_space<vmem>>, vector<8x128xf32>,
    %39 = arith.mulf %33, %6 : vector<8x128xf32>
    %c0_17 = arith.constant 0 : index
    %c0_18 = arith.constant 0 : index
    %40 = vector.load %arg7[%c0_17, %c0_18] : memref<8x128xf32, #tpu.memory_space<vmem>>, vector<8x128xf32>
    %41 = vector.shape_cast %39 : vector<8x128xf32> to vector<1x8x128xf32>
    %cst_19 = arith.constant dense<0.000000e+00> : vector<8x128xf32>
    %42 = vector.multi_reduction <add>, %41, %cst_19 [0] : vector<1x8x128xf32> to vector<8x128xf32>
    %43 = arith.addf %40, %42 : vector<8x128xf32>
    %c0_20 = arith.constant 0 : index
    %c0_21 = arith.constant 0 : index
    %44 = vector.load %arg7[%c0_20, %c0_21] : memref<8x128xf32, #tpu.memory_space<vmem>>, vector<8x128xf32>
    tpu.vector_store %arg7[%c0_20, %c0_21], %43 {strides = array<i32>} : memref<8x128xf32, #tpu.memory_space<vmem>>, vector<8x128xf32>,
    %c0_22 = arith.constant 0 : index
    %c0_23 = arith.constant 0 : index
    %45 = vector.load %arg8[%c0_22, %c0_23] : memref<8x128xf32, #tpu.memory_space<vmem>>, vector<8x128xf32>
    %46 = vector.shape_cast %33 : vector<8x128xf32> to vector<1x8x128xf32>
    %cst_24 = arith.constant dense<0.000000e+00> : vector<8x128xf32>
    %47 = vector.multi_reduction <add>, %46, %cst_24 [0] : vector<1x8x128xf32> to vector<8x128xf32>
    %48 = arith.addf %45, %47 : vector<8x128xf32>
    %c0_25 = arith.constant 0 : index
    %c0_26 = arith.constant 0 : index
    %49 = vector.load %arg8[%c0_25, %c0_26] : memref<8x128xf32, #tpu.memory_space<vmem>>, vector<8x128xf32>
    tpu.vector_store %arg8[%c0_25, %c0_26], %48 {strides = array<i32>} : memref<8x128xf32, #tpu.memory_space<vmem>>, vector<8x128xf32>,
    %c0_27 = arith.constant 0 : index
    %c0_28 = arith.constant 0 : index
    %50 = vector.load %arg9[%c0_27, %c0_28] : memref<8x128xf32, #tpu.memory_space<vmem>>, vector<8x128xf32>
    %51 = vector.shape_cast %6 : vector<8x128xf32> to vector<1x8x128xf32>
    %cst_29 = arith.constant dense<0.000000e+00> : vector<8x128xf32>
    %52 = vector.multi_reduction <add>, %51, %cst_29 [0] : vector<1x8x128xf32> to vector<8x128xf32>
    %53 = arith.addf %50, %52 : vector<8x128xf32>
    %c0_30 = arith.constant 0 : index
    %c0_31 = arith.constant 0 : index
    %54 = vector.load %arg9[%c0_30, %c0_31] : memref<8x128xf32, #tpu.memory_space<vmem>>, vector<8x128xf32>
    tpu.vector_store %arg9[%c0_30, %c0_31], %53 {strides = array<i32>} : memref<8x128xf32, #tpu.memory_space<vmem>>, vector<8x128xf32>,
    %c0_i32_32 = arith.constant 0 : i32
    %55 = arith.cmpi eq, %arg2, %c0_i32_32 : i32
    %56 = arith.extui %55 : i1 to i32
    %c0_i32_33 = arith.constant 0 : i32
    %57 = arith.cmpi ne, %56, %c0_i32_33 : i32
    scf.if %57 {
      %c0_34 = arith.constant 0 : index
      %c0_35 = arith.constant 0 : index
      %58 = vector.load %arg6[%c0_34, %c0_35] : memref<8x128xf32, #tpu.memory_space<vmem>>, vector<8x128xf32>
      %59 = vector.shape_cast %58 : vector<8x128xf32> to vector<1x8x128xf32>
      %cst_36 = arith.constant dense<0.000000e+00> : vector<1xf32>
      %60 = vector.multi_reduction <add>, %59, %cst_36 [1, 2] : vector<1x8x128xf32> to vector<1xf32>
      %61 = vector.shape_cast %60 : vector<1xf32> to vector<1x1x1xf32>
      %62 = vector.extract %61[0, 0, 0] : f32 from vector<1x1x1xf32>
      %c0_37 = arith.constant 0 : index
      %c0_38 = arith.constant 0 : index
      %63 = vector.load %arg7[%c0_37, %c0_38] : memref<8x128xf32, #tpu.memory_space<vmem>>, vector<8x128xf32>
      %64 = vector.shape_cast %63 : vector<8x128xf32> to vector<1x8x128xf32>
      %cst_39 = arith.constant dense<0.000000e+00> : vector<1xf32>
      %65 = vector.multi_reduction <add>, %64, %cst_39 [1, 2] : vector<1x8x128xf32> to vector<1xf32>
      %66 = vector.shape_cast %65 : vector<1xf32> to vector<1x1x1xf32>
      %67 = vector.extract %66[0, 0, 0] : f32 from vector<1x1x1xf32>
      %c0_40 = arith.constant 0 : index
      %c0_41 = arith.constant 0 : index
      %68 = vector.load %arg8[%c0_40, %c0_41] : memref<8x128xf32, #tpu.memory_space<vmem>>, vector<8x128xf32>
      %69 = vector.shape_cast %68 : vector<8x128xf32> to vector<1x8x128xf32>
      %cst_42 = arith.constant dense<0.000000e+00> : vector<1xf32>
      %70 = vector.multi_reduction <add>, %69, %cst_42 [1, 2] : vector<1x8x128xf32> to vector<1xf32>
      %71 = vector.shape_cast %70 : vector<1xf32> to vector<1x1x1xf32>
      %72 = vector.extract %71[0, 0, 0] : f32 from vector<1x1x1xf32>
      %c0_43 = arith.constant 0 : index
      %c0_44 = arith.constant 0 : index
      %73 = vector.load %arg9[%c0_43, %c0_44] : memref<8x128xf32, #tpu.memory_space<vmem>>, vector<8x128xf32>
      %74 = vector.shape_cast %73 : vector<8x128xf32> to vector<1x8x128xf32>
      %cst_45 = arith.constant dense<0.000000e+00> : vector<1xf32>
      %75 = vector.multi_reduction <add>, %74, %cst_45 [1, 2] : vector<1x8x128xf32> to vector<1xf32>
      %76 = vector.shape_cast %75 : vector<1xf32> to vector<1x1x1xf32>
      %77 = vector.extract %76[0, 0, 0] : f32 from vector<1x1x1xf32>
      %78 = tpu.iota {dimensions = array<i32: 0>} : vector<8x128xi32>
      %c0_i32_46 = arith.constant 0 : i32
      %79 = vector.broadcast %c0_i32_46 : i32 to vector<8x128xi32>
      %80 = arith.cmpi eq, %78, %79 : vector<8x128xi32>
      %cst_47 = arith.constant 0.000000e+00 : f32
      %81 = vector.broadcast %62 : f32 to vector<8x128xf32>
      %82 = vector.broadcast %cst_47 : f32 to vector<8x128xf32>
      %83 = arith.select %80, %81, %82 : vector<8x128xi1>, vector<8x128xf32>
      %c1_i32 = arith.constant 1 : i32
      %84 = vector.broadcast %c1_i32 : i32 to vector<8x128xi32>
      %85 = arith.cmpi eq, %78, %84 : vector<8x128xi32>
      %cst_48 = arith.constant 0.000000e+00 : f32
      %86 = vector.broadcast %67 : f32 to vector<8x128xf32>
      %87 = vector.broadcast %cst_48 : f32 to vector<8x128xf32>
      %88 = arith.select %85, %86, %87 : vector<8x128xi1>, vector<8x128xf32>
      %89 = arith.addf %83, %88 : vector<8x128xf32>
      %c2_i32 = arith.constant 2 : i32
      %90 = vector.broadcast %c2_i32 : i32 to vector<8x128xi32>
      %91 = arith.cmpi eq, %78, %90 : vector<8x128xi32>
      %cst_49 = arith.constant 0.000000e+00 : f32
      %92 = vector.broadcast %72 : f32 to vector<8x128xf32>
      %93 = vector.broadcast %cst_49 : f32 to vector<8x128xf32>
      %94 = arith.select %91, %92, %93 : vector<8x128xi1>, vector<8x128xf32>
      %95 = arith.addf %89, %94 : vector<8x128xf32>
      %c3_i32 = arith.constant 3 : i32
      %96 = vector.broadcast %c3_i32 : i32 to vector<8x128xi32>
      %97 = arith.cmpi eq, %78, %96 : vector<8x128xi32>
      %cst_50 = arith.constant 0.000000e+00 : f32
      %98 = vector.broadcast %77 : f32 to vector<8x128xf32>
      %99 = vector.broadcast %cst_50 : f32 to vector<8x128xf32>
      %100 = arith.select %97, %98, %99 : vector<8x128xi1>, vector<8x128xf32>
      %101 = arith.addf %95, %100 : vector<8x128xf32>
      %c0_51 = arith.constant 0 : index
      %c0_52 = arith.constant 0 : index
      %c0_53 = arith.constant 0 : index
      %c0_54 = arith.constant 0 : index
      %102 = vector.load %arg5[%c0_51, %c0_52, %c0_53, %c0_54] : memref<1x1x8x128xf32, #tpu.memory_space<vmem>>, vector<1x1x8x128xf32>
      %103 = vector.shape_cast %102 : vector<1x1x8x128xf32> to vector<8x128xf32>
      %104 = vector.shape_cast %101 : vector<8x128xf32> to vector<1x1x8x128xf32>
      tpu.vector_store %arg5[%c0_51, %c0_52, %c0_53, %c0_54], %104 {strides = array<i32>} : memref<1x1x8x128xf32, #tpu.memory_space<vmem>>, vector<1x1x8x128xf32>,
    } else {
    }
    return
  }
  func.func @transform_0(%arg0: i32, %arg1: i32, %arg2: i32) -> (i32, i32, i32) {
    %c1_i32 = arith.constant 1 : i32
    %0 = arith.muli %arg1, %c1_i32 : i32
    %1 = arith.addi %0, %arg2 : i32
    %c0_i32 = arith.constant 0 : i32
    %c0_i32_0 = arith.constant 0 : i32
    return %arg0, %1, %c0_i32 : i32, i32, i32
  }
  func.func @transform_1(%arg0: i32, %arg1: i32, %arg2: i32) -> (i32, i32, i32) {
    %c1_i32 = arith.constant 1 : i32
    %0 = arith.muli %arg1, %c1_i32 : i32
    %1 = arith.addi %0, %arg2 : i32
    %c0_i32 = arith.constant 0 : i32
    %c0_i32_0 = arith.constant 0 : i32
    return %arg0, %1, %c0_i32 : i32, i32, i32
  }
  func.func @transform_2(%arg0: i32, %arg1: i32, %arg2: i32) -> (i32, i32, i32, i32) {
    %c0_i32 = arith.constant 0 : i32
    %c0_i32_0 = arith.constant 0 : i32
    %c0_i32_1 = arith.constant 0 : i32
    return %arg0, %arg1, %c0_i32, %c0_i32_0 : i32, i32, i32, i32
  }
}

</mosaic_0001>

<bundles_post_ra>
// kernel: tpu_custom_call.1
= control target key start
LH: loop header
LB: loop body
LE: loop exit
PB: predicated region body
PF: predicated region fallthrough
CT: control target
= control target key end

     0   :  { %7 = vsyncpa [#allocation7], 0  ;;  %s953_s0 = inlined_call_operand.hbm [shape: f32[2,8,128], index: 0, kind: input, shape index: {}]   ;;  %s954_s1 = inlined_call_operand.hbm [shape: f32[2,8,128], index: 1, kind: input, shape index: {}]   ;;  %s955_s2 = inlined_call_operand.hbm [shape: f32[2,1,8,128], index: 2, kind: output, shape index: {}]  }
   0x1   :  { %9 = vsyncpa [#allocation7 + $0x1], 0 }
   0x2   :  { %10 = vsyncpa [#allocation10], 0 }
   0x3   :  { %12 = vsyncpa [#allocation10 + $0x1], 0 }
   0x4   :  { %13 = vsyncpa [#allocation8], 0 }
   0x5   :  { %15 = vsyncpa [#allocation8 + $0x1], 0  ;;  %s728_s9 = smov 0   ;;  %s730_s10 = smov 0  }
   0x6   :  { %s732_s11 = smov 0   ;;  %s734_s12 = smov 0  }
   0x7   :  { %s736_s13 = smov 0   ;;  %s738_s14 = smov 0  }
   0x8 LB: > { %s465_s15 = sadd.s32 4294967295, %s708_s14   ;;  %s466_s16 = sadd.s32 4294967294, %s708_s14   ;;  %s708_s14 = sphi %s738_s14, %s21_s14   ;;  %s704_s13 = sphi %s736_s13, %s975_s13   ;;  %s700_s12 = sphi %s734_s12, %s974_s12   ;;  %s696_s11 = sphi %s732_s11, %s973_s11   ;;  %s692_s10 = sphi %s730_s10, %s972_s10   ;;  %s688_s9 = sphi %s728_s9, %s971_s9  }
   0x9   : > { %s40_s17 = sadd.s32 1, %s704_s13  ;;  %s51_s18 = sadd.s32 1, %s696_s11 }
   0xa   : > { %p42_p0 = scmp.ge.s32.totalorder %s40_s17, 2  ;;  %p58_p1 = scmp.ne.s32.totalorder %s696_s11, %s692_s10 }
   0xb   : > { %p59_p2 = scmp.eq.s32.totalorder %s708_s14, 0  ;;  %p64_p3 = scmp.ne.s32.totalorder %s692_s10, %s688_s9 }
   0xc   : > { %s977_s17 = smov (%p42_p0, %s40_s17), 0  ;;  %p65_p5 = scmp.eq.s32.totalorder %s465_s15, 0 }
   0xd   : > { %p769_p4 = por %p59_p2, %p58_p1  ;;  %s46_s20 = ssub.s32 %s704_s13, %s977_s17 }
   0xe   : > { %p120_p6 = scmp.eq.s32.totalorder %s465_s15, 1  ;;  %p49_p7 = scmp.eq.s32.totalorder %s46_s20, 0 }
   0xf   : > { %p775_p8 = por %p65_p5, %p64_p3  ;;  %p126_p10 = scmp.eq.s32.totalorder %s466_s16, 1 }
  0x10   : > { %p779_p9 = por %p120_p6, %p58_p1  ;;  %p506_p13 = scmp.lt.s32.totalorder %s708_s14, 2 }
  0x11   : > { %s959_s21 = scalar_select %p775_p8, 1, 0 }
  0x12   : > { %s960_s22 = scalar_select %p779_p9, 1, 0 }
  0x13   : > { %s784_s23 = scalar_select %p49_p7, %s696_s11, %s51_s18  }
  0x14   : > { %p786_p11 = por %p126_p10, %p64_p3  ;;  %s793_s25 = sand.u32 1, %s696_s11  }
  0x15   : > { %s469_s26 = sshll.u32 %s793_s25, 3  ;;  %s470_s27 = sshll.u32 %s704_s13, 7 }
  0x16   : > { %s961_s24 = scalar_select %p786_p11, 1, 0 }
  0x17   : > { %s802_s30 = scalar_lea.hbm %s953_s0, %s470_s27  ;;  %s150_s3 = scalar_lea.vmem [#allocation6], %s469_s26 }
  0x18   : > { %s159_s4 = sshll.u32 %s150_s3, 4  ;;  %p810_p0 = pnand %p506_p13, %p769_p4  ;;  %s806_s4 = int_to_ptr.vmem [resolvable:$true] %s159_s4 }
  0x19   : > { %s147_s6 = scalar_lea.sflag [#allocation7], %s793_s25  ;;  %s562_s7 = scalar_lea.hbm %s802_s30, 128 }
  0x1a   : > { %p563_p3 = scmp.ne.s32.totalorder %s802_s30, %s562_s7  ;;  %p564_p5 = pneg %p810_p0 }
  0x1b   : > { %s567_s16 = scalar_lea.hbm %s953_s0, 256  ;;  %p568_p4 = scmp.lt.u32.totalorder %s802_s30, %s953_s0 }
  0x1c   : > { %p565_p6 = pnand %p564_p5, %p563_p3  ;;  %p569_p10 = scmp.lt.u32.totalorder %s567_s16, %s562_s7 }
  0x1d   : > { %p571_p12 = scmp.lt.u32.totalorder %s562_s7, %s802_s30 }
  0x1e   : > { %p566_p7 = pneg %p565_p6  ;;  %p570_p13 = por %p569_p10, %p568_p4 }
  0x20   : > { %p572_p1 = por %p571_p12, %p570_p13 }
  0x22   : > { %p573_p2 = pnand %p572_p1, %p566_p7 }
  0x24   : > { %576 = shalt.err (!%p573_p2)
}
  0x25   : > { %s577_s20 = scalar_lea.vmem %s806_s4, 128  ;;  %s710_s28 = smov [#allocation6]  }
  0x26   : > { %p578_p3 = scmp.ne.s32.totalorder %s806_s4, %s577_s20  ;;  %s582_s29 = sshll.u32 %s710_s28, 4  ;;  %s583_s29 = int_to_ptr.vmem [resolvable:$false] %s582_s29 }
  0x27   : > { %s584_s3 = scalar_lea.vmem %s583_s29, 256  ;;  %p585_p9 = scmp.lt.s32.totalorder %s806_s4, %s583_s29 }
  0x28   : > { %p580_p6 = pnand %p578_p3, %p564_p5  ;;  %p586_p4 = scmp.lt.s32.totalorder %s584_s3, %s577_s20 }
  0x2a   : > { %p581_p11 = pneg %p580_p6  ;;  %p587_p10 = por %p586_p4, %p585_p9 }
  0x2c   : > { %p588_p12 = pnand %p587_p10, %p581_p11 }
  0x2e   : > { %591 = shalt.err (!%p588_p12)
}
  0x2f   : > { %498 = dma.hbm_to_vmem [thread:$0]  (!%p810_p0), %s802_s30, 128, %s806_s4, %s147_s6  }
  0x30   : > { %p963_p1 = scmp.lt.s32.totalorder %s708_s14, 3  ;;  %p964_p2 = scmp.ge.s32.totalorder %s708_s14, 1 }
  0x31   : > { %s855_s16 = scalar_lea.hbm %s954_s1, %s470_s27  ;;  %s170_s18 = scalar_lea.vmem [#allocation9], %s469_s26 }
  0x32   : > { %p846_p7 = pnand %p964_p2, %p963_p1  ;;  %s179_s19 = sshll.u32 %s170_s18, 4  ;;  %s180_s19 = int_to_ptr.vmem [resolvable:$true] %s179_s19 }
  0x33   : > { %s167_s30 = scalar_lea.sflag [#allocation10], %s793_s25  ;;  %s592_s4 = scalar_lea.hbm %s855_s16, 128 }
  0x34   : > { %s965_s7 = scalar_select %p846_p7, 1, 0 }
  0x35   : > { %p593_p9 = scmp.ne.s32.totalorder %s855_s16, %s592_s4  ;;  %s597_s27 = scalar_lea.hbm %s954_s1, 256 }
  0x36   : > { %p598_p3 = scmp.lt.u32.totalorder %s855_s16, %s954_s1  ;;  %p599_p6 = scmp.lt.u32.totalorder %s597_s27, %s592_s4 }
  0x37   : > { %p595_p11 = pnand %p593_p9, %p564_p5  ;;  %p601_p10 = scmp.lt.u32.totalorder %s592_s4, %s855_s16 }
  0x38   : > { %p600_p4 = por %p599_p6, %p598_p3 }
  0x39   : > { %p596_p13 = pneg %p595_p11 }
  0x3a   : > { %p602_p12 = por %p601_p10, %p600_p4 }
  0x3c   : > { %p603_p1 = pnand %p602_p12, %p596_p13 }
  0x3e   : > { %606 = shalt.err (!%p603_p1)
}
  0x3f   : > { %s607_s25 = scalar_lea.vmem %s180_s19, 128  ;;  %s711_s26 = smov [#allocation9]  }
  0x40   : > { %p608_p2 = scmp.ne.s32.totalorder %s180_s19, %s607_s25  ;;  %s612_s3 = sshll.u32 %s711_s26, 4  ;;  %s613_s3 = int_to_ptr.vmem [resolvable:$false] %s612_s3 }
  0x41   : > { %s614_s8 = scalar_lea.vmem %s613_s3, 256  ;;  %p615_p8 = scmp.lt.s32.totalorder %s180_s19, %s613_s3 }
  0x42   : > { %p610_p9 = pnand %p608_p2, %p564_p5  ;;  %p616_p7 = scmp.lt.s32.totalorder %s614_s8, %s607_s25 }
  0x44   : > { %p611_p11 = pneg %p610_p9  ;;  %p617_p3 = por %p616_p7, %p615_p8 }
  0x46   : > { %p618_p6 = pnand %p617_p3, %p611_p11 }
  0x48   : > { %621 = shalt.err (!%p618_p6)
}
  0x49   : > { %501 = dma.hbm_to_vmem [thread:$0]  (!%p810_p0), %s855_s16, 128, %s180_s19, %s167_s30  }
  0x4a   : > { %p966_p13 = scmp.ne.s32.totalorder %s965_s7, 0 }
  0x4b   : > { %s882_s15 = sand.u32 (!%p966_p13), 1, %s692_s10   ;;  %p967_p8 = scmp.ne.s32.totalorder (!%p966_p13), %s959_s21, 0 }
  0x4c   : > { %188 = sbr.rel (%p966_p13) target bundleno = 362 (0x16a), region = 28  ;;  %s885_s18 = sshll.u32 (!%p966_p13), %s882_s15, 3 }
  0x4d   : > { %s191_s4 = scalar_lea.sflag (!%p966_p13), [#allocation7], %s882_s15  ;;  %s194_s6 = scalar_lea.vmem (!%p966_p13), [#allocation6], %s885_s18 }
  0x53   : > { %675 = dma.done.wait (%p967_p8), %s191_s4, 128  }
  0x54   : > { %677 = vsyncadd (%p967_p8), %s191_s4, 4294967168  ;;  %s200_s5 = scalar_lea.sflag [#allocation10], %s882_s15  ;;  %s203_s7 = scalar_lea.vmem [#allocation9], %s885_s18 }
  0x55   : > { %679 = dma.done.wait (%p967_p8), %s200_s5, 128  }
  0x56   : > { %681 = vsyncadd (%p967_p8), %s200_s5, 4294967168  ;;  %v239_v0 = vld [vmem:[%s194_s6] sm:$0xff]  ;;  %v240_v19 = vld [vmem:[%s203_s7] sm:$0xff]  ;;  %v323_v52 = vlaneseq  ;;  %s478_s20 = sshll.u32 %s700_s12, 7  ;;  %s228_s27 = scalar_lea.vmem [#allocation11], %s885_s18 }
  0x57   : > { %v241_v1 = vand.u32 2147483647, %v239_v0  ;;  %v248_v7 = vmax.f32 %v239_v0, 0.0  ;;  %vm260_vm0 = vcmp.ge.f32.partialorder %v239_v0, 0.0  ;;  %s356_s28 = sshll.u32 %s228_s27, 4  ;;  %s904_s26 = scalar_lea.hbm %s955_s2, %s478_s20  ;;  %s906_s28 = int_to_ptr.vmem [resolvable:$true] %s356_s28 }
  0x58   : > { %v324_v53 = vshrl.u32 %v323_v52, 7  ;;  %s342_s3 = scalar_lea.sflag [#allocation8], %s882_s15  ;;  %s622_s8 = scalar_lea.vmem %s906_s28, 128 }
  0x59   : > { %v242_v2 = vsub.f32 0.0, %v241_v1  ;;  %p623_p0 = scmp.ne.s32.totalorder %s906_s28, %s622_s8  ;;  %p968_p5 = scmp.ne.s32.totalorder %s960_s22, 0 }
  0x5a   : > { %vm325_vm1 = vcmp.eq.s32.totalorder %v324_v53, 0  ;;  %vm328_vm2 = vcmp.eq.s32.totalorder %v324_v53, 1  ;;  %vm332_vm3 = vcmp.eq.s32.totalorder %v324_v53, 2  ;;  %vm336_vm4 = vcmp.eq.s32.totalorder %v324_v53, 3  ;;  %s712_s12 = smov [#allocation11]  }
  0x5b   : > { %v243_v3 = vmul.f32 1.442695, %v242_v2  ;;  %p624_p7 = pnand %p623_p0, %p968_p5  ;;  %s626_s18 = sshll.u32 %s712_s12, 4  ;;  %s627_s18 = int_to_ptr.vmem [resolvable:$false] %s626_s18 }
  0x5c   : > { %s628_s4 = scalar_lea.vmem %s627_s18, 256  ;;  %p629_p10 = scmp.lt.s32.totalorder %s906_s28, %s627_s18 }
  0x5d   : > { %556 = vpow2.f32 %v243_v3  ;;  %p625_p4 = pneg %p624_p7  ;;  %p630_p12 = scmp.lt.s32.totalorder %s628_s4, %s622_s8 }
  0x5f   : > { %p631_p1 = por %p630_p12, %p629_p10 }
  0x61   : > { %p632_p2 = pnand %p631_p1, %p625_p4 }
  0x67   : > { %v557_v4 = vpop.eup %556 }
  0x68   : > { %v245_v5 = vadd.f32 1.0, %v557_v4 }
  0x6a   : > { %558 = vrcp.f32 %v245_v5 }
  0x6b   : > { %560 = vlog2.f32 %v245_v5 }
  0x74   : > { %v559_v6 = vpop.eup %558 }
  0x75   : > { %v561_v8 = vpop.eup %560  ;;  %v257_v9 = vmul.f32 %v559_v6, %v245_v5 }
  0x76   : > { %v247_v10 = vmul.f32 0.6931472, %v561_v8 }
  0x77   : > { %v258_v11 = vsub.f32 2.0, %v257_v9 }
  0x78   : > { %v249_v12 = vadd.f32 %v248_v7, %v247_v10 }
  0x79   : > { %v259_v13 = vmul.f32 %v559_v6, %v258_v11 }
  0x7a   : > { %v250_v14 = vsub.f32 %v249_v12, %v239_v0  ;;  %v251_v15 = vmin.f32 %v249_v12, 100.0 }
  0x7b   : > { %v261_v16 = vmul.f32 %v557_v4, %v259_v13 }
  0x7c   : > { %v252_v17 = vmin.f32 %v250_v14, 100.0 }
  0x7d   : > { %v262_v18 = vsel %vm260_vm0, %v259_v13, %v261_v16 }
  0x7e   : > { %304 = vadd.xlane.f32.xlu1 %v262_v18  ;;  %v253_v20 = vsub.f32 %v252_v17, %v251_v15  ;;  %v267_v23 = vmul.f32 %v262_v18, %v240_v19 }
  0x80   : > { %v254_v21 = vmul.f32 %v253_v20, %v240_v19 }
  0x82   : > { %v255_v22 = vadd.f32 %v254_v21, %v251_v15  ;;  %314 = vadd.xlane.f32.xlu1 %v240_v19 }
  0x84   : > { %284 = vadd.xlane.f32.xlu0 %v255_v22 }
  0x88   : > { %294 = vadd.xlane.f32.xlu0 %v267_v23 }
 0x10b   : > { %v305_v24 = vpop.xlane.xlu1 %304 }
 0x10c   : > { %v306_v25 = vrot.slane %v305_v24, 4 }
 0x10e   : > { %v307_v28 = vadd.f32 %v306_v25, %v305_v24 }
 0x10f   : > { %v315_v26 = vpop.xlane.xlu1 %314 }
 0x110   : > { %v316_v27 = vrot.slane %v315_v26, 4  ;;  %v308_v33 = vrot.slane %v307_v28, 2 }
 0x111   : > { %v285_v29 = vpop.xlane.xlu0 %284 }
 0x112   : > { %v286_v30 = vrot.slane %v285_v29, 4  ;;  %v317_v31 = vadd.f32 %v316_v27, %v315_v26  ;;  %v309_v40 = vadd.f32 %v308_v33, %v307_v28 }
 0x114   : > { %v287_v32 = vadd.f32 %v286_v30, %v285_v29  ;;  %v318_v36 = vrot.slane %v317_v31, 2  ;;  %v310_v46 = vrot.slane %v309_v40, 1 }
 0x115   : > { %v295_v34 = vpop.xlane.xlu0 %294 }
 0x116   : > { %v288_v35 = vrot.slane %v287_v32, 2  ;;  %v296_v37 = vrot.slane %v295_v34, 4  ;;  %v319_v41 = vadd.f32 %v318_v36, %v317_v31  ;;  %v311_v50 = vadd.f32 %v310_v46, %v309_v40 }
 0x118   : > { %v297_v38 = vadd.f32 %v296_v37, %v295_v34  ;;  %v289_v39 = vadd.f32 %v288_v35, %v287_v32  ;;  %v320_v48 = vrot.slane %v319_v41, 1 }
 0x11a   : > { %v298_v42 = vrot.slane %v297_v38, 2  ;;  %v290_v43 = vrot.slane %v289_v39, 1  ;;  %v321_v51 = vadd.f32 %v320_v48, %v319_v41 }
 0x11c   : > { %v299_v44 = vadd.f32 %v298_v42, %v297_v38  ;;  %v291_v45 = vadd.f32 %v290_v43, %v289_v39 }
 0x11e   : > { %481 = vpush %v291_v45  ;;  %v300_v47 = vrot.slane %v299_v44, 1 }
 0x120   : > { %v301_v49 = vadd.f32 %v300_v47, %v299_v44 }
 0x122   : > { %483 = vpush %v301_v49 }
 0x123   : > { %485 = vpush %v311_v50 }
 0x124   : > { %487 = vpush %v321_v51 }
 0x14f   : > { %s482_s21 = spop %481 }
 0x150   : > { %v326_v54 = vstv %s482_s21 }
 0x151   : > { %v327_v56 = vsel %vm325_vm1, %v326_v54, 0.0 }
 0x153   : > { %s484_s16 = spop %483 }
 0x154   : > { %v329_v55 = vstv %s484_s16  ;;  %s486_s19 = spop %485 }
 0x155   : > { %v330_v57 = vsel %vm328_vm2, %v329_v55, 0.0  ;;  %v333_v58 = vstv %s486_s19  ;;  %s488_s30 = spop %487 }
 0x156   : > { %v331_v59 = vadd.f32 %v330_v57, %v327_v56  ;;  %v337_v60 = vstv %s488_s30  ;;  %v334_v61 = vsel %vm332_vm3, %v333_v58, 0.0 }
 0x157   : > { %v338_v63 = vsel %vm336_vm4, %v337_v60, 0.0 }
 0x158   : > { %v335_v62 = vadd.f32 %v334_v61, %v331_v59 }
 0x15a   : > { %v339_v0 = vadd.f32 %v338_v63, %v335_v62 }
 0x15c   : > { %340 = vst [vmem:[%s228_s27] sm:$0xff] %v339_v0 }
 0x15d   : > { %635 = shalt.err (!%p632_p2)
}
 0x15e   : > { %s636_s15 = scalar_lea.hbm %s904_s26, 128  ;;  %s640_s7 = scalar_lea.hbm %s955_s2, 256 }
 0x15f   : > { %p637_p9 = scmp.ne.s32.totalorder %s904_s26, %s636_s15  ;;  %p641_p6 = scmp.lt.u32.totalorder %s904_s26, %s955_s2 }
 0x160   : > { %p642_p13 = scmp.lt.u32.totalorder %s640_s7, %s636_s15  ;;  %p644_p0 = scmp.lt.u32.totalorder %s636_s15, %s904_s26 }
 0x161   : > { %p638_p11 = pnand %p637_p9, %p968_p5 }
 0x162   : > { %p643_p8 = por %p642_p13, %p641_p6 }
 0x163   : > { %p639_p3 = pneg %p638_p11 }
 0x164   : > { %p645_p7 = por %p644_p0, %p643_p8 }
 0x166   : > { %p646_p4 = pnand %p645_p7, %p639_p3 }
 0x168   : > { %649 = shalt.err (!%p646_p4)
}
 0x169   : > { %493 = dma.vmem_to_hbm [thread:$0]  (%p968_p5), %s906_s28, 128, %s904_s26, %s342_s3  }
 0x16a PF: > { %s368_s19 = sand.u32 1, %s688_s9   ;;  %p969_p10 = scmp.ne.s32.totalorder %s961_s24, 0 }
 0x16b   : > { %p970_p12 = scmp.ge.s32.totalorder %s708_s14, 2  ;;  %s369_s30 = scalar_lea.sflag [#allocation8], %s368_s19 }
 0x16d   : > { %p503_p1 = pnand %p970_p12, %p969_p10 }
 0x16f   : > { %683 = dma.done.wait (!%p503_p1), %s369_s30, 128  }
 0x170   : > { %685 = vsyncadd (!%p503_p1), %s369_s30, 4294967168  ;;  %s21_s14 = sadd.s32 1, %s708_s14   ;;  %s971_s9 = smov %s692_s10 }
 0x171   : > { %p18_p2 = scmp.ge.s32.totalorder %s21_s14, 4   ;;  %s972_s10 = smov %s696_s11 }
 0x172   : > { %s973_s11 = smov %s784_s23  ;;  %s974_s12 = smov %s704_s13 }
 0x173   : > { %s975_s13 = smov %s977_s17  ;;  %20 = sbr.rel (!%p18_p2) target bundleno = 8 (0x8), region = 94 }
 0x17a   :  { %374 = vsyncpa [#allocation7], 1 }
 0x17b   :  { %376 = vsyncpa [#allocation7 + $0x1], 1 }
 0x17c   :  { %377 = vsyncpa [#allocation10], 1 }
 0x17d   :  { %379 = vsyncpa [#allocation10 + $0x1], 1 }
 0x17e   :  { %380 = vsyncpa [#allocation8], 1 }
 0x17f   :  { %382 = vsyncpa [#allocation8 + $0x1], 1 }

</bundles_post_ra>
